<compile_context>
chip_gen: v5e
topology: v5e:2x2
jax: 0.10.0
libtpu: 0.0.40
codegen_flags: <defaults>
</compile_context>

<pallas_src>
import math
import numpy as np

import jax
import jax.numpy as jnp
from jax.experimental import pallas as pl
from jax.experimental.pallas import tpu as pltpu


# ----------------------------------------------------------------------------
# Glue: 1-D bicubic interpolation matrix (PyTorch bicubic, align_corners=False,
# a=-0.75, indices clamped at the border).
# ----------------------------------------------------------------------------
def _cubic_weight(t: float, a: float = -0.75) -> float:
    t = abs(t)
    if t <= 1.0:
        return (a + 2.0) * t ** 3 - (a + 3.0) * t ** 2 + 1.0
    if t < 2.0:
        return a * t ** 3 - 5.0 * a * t ** 2 + 8.0 * a * t - 4.0 * a
    return 0.0


def bicubic_resize_matrix(old_size: int, new_size: int) -> np.ndarray:
    """W such that out = W @ in resizes a length-`old_size` axis to `new_size`."""
    if new_size == old_size:
        return np.eye(old_size, dtype=np.float32)
    W = np.zeros((new_size, old_size), dtype=np.float64)
    scale = old_size / new_size
    for i in range(new_size):
        x = (i + 0.5) * scale - 0.5
        x0 = math.floor(x)
        frac = x - x0
        for k in range(-1, 3):
            w = _cubic_weight(frac - k)
            idx = min(max(x0 + k, 0), old_size - 1)  # border replicate
            W[i, idx] += w
    return W.astype(np.float32)
    # TODO(synk): timm's resize_abs_pos_embed defaults to antialias=True; identical
    # for upscaling (the only case exercised by this module), diverges if downscaling.


def resize_pos_embed_separable(pos_embed, base_size: int, new_size: int):
    """(1, base**2, C) -> (new**2, C) via separable bicubic (== kron(w1d,w1d) @ flat)."""
    C = pos_embed.shape[-1]
    flat = pos_embed.reshape(base_size * base_size, C)
    if new_size == base_size:
        return flat  # identity path: no matmul at all
    w1d = jnp.asarray(bicubic_resize_matrix(base_size, new_size))  # (new, old)
    grid = flat.reshape(base_size, base_size, C)
    hi = jax.lax.Precision.HIGHEST        # tiny matmuls: keep them f32-exact
    tmp = jnp.einsum("no,ohc->nhc", w1d, grid, precision=hi)   # resize rows
    out = jnp.einsum("mh,nhc->nmc", w1d, tmp, precision=hi)    # resize columns
    return out.reshape(new_size * new_size, C)


# ----------------------------------------------------------------------------
# Pallas kernel: fused lane-dense broadcast-add for the three streams.
#   x refs:   (bt, tf_s)  token tiles (lane-dense 2-D slabs)
#   pos refs: (1,  tf_s)  precomputed resized position embedding chunk (broadcast)
# ----------------------------------------------------------------------------
def _fused_bias_add_kernel(ogm_ref, map_ref, flow_ref,
                           ogm_pos_ref, map_pos_ref, flow_pos_ref,
                           ogm_out_ref, map_out_ref, flow_out_ref):
    # Pure VPU broadcast-adds; pos rows are pre-cast to the token dtype.
    ogm_out_ref[...] = ogm_ref[...] + ogm_pos_ref[...]
    map_out_ref[...] = map_ref[...] + map_pos_ref[...]
    flow_out_ref[...] = flow_ref[...] + flow_pos_ref[...]


# ----------------------------------------------------------------------------
# Tiling / VMEM sizing
# ----------------------------------------------------------------------------
def _vmem_capacity_bytes() -> int:
    try:
        return int(pltpu.get_tpu_info().vmem_capacity_bytes)
    except Exception:
        return 64 << 20  # v7x per-TC capacity: conservative fallback


def _choose_tiling(B, feats, itemsizes, budget_bytes):
    """Pick a (batch_tile, num_feature_tiles) pair shared by all three streams.

    Every stream's feature axis is split into `nf` equal 128-lane-aligned chunks
    (nf == 1 keeps full rows). Per-step VMEM is budgeted including Pallas'
    double buffering and the 8x sublane padding of the (1, tf) pos blocks.
    """
    max_nf = max(min(f // 128 for f in feats), 1)
    valid_nfs = [nf for nf in range(1, max_nf + 1)
                 if all(f % nf == 0 and (f // nf) % 128 == 0 for f in feats)]
    if not valid_nfs:
        valid_nfs = [1]  # feature width not 128-aligned: keep full rows per step

    def step_bytes(bt, nf):
        pbt = -(-bt // 8) * 8  # sublane-padded batch rows
        # 2 double-buffered input tiles + 2 output tiles per stream, plus the
        # (1, tf) pos block padded to 8 sublanes and double-buffered.
        return sum((4 * pbt + 2 * 8) * (f // nf) * isz
                   for f, isz in zip(feats, itemsizes))

    # Biggest tiles that fit: whole batch per step, smallest valid feature split.
    bt = B
    nf = next((n for n in valid_nfs if step_bytes(bt, n) <= budget_bytes),
              valid_nfs[-1])
    # If even the finest feature split overflows, shrink the batch tile
    # (multiples of 8 only, so tiled blocks keep (8, 128) alignment).
    while bt > 8 and step_bytes(bt, nf) > budget_bytes:
        bt = max(8, ((bt // 2) + 7) // 8 * 8)

    # v7x megacore: the "parallel" axes need >= 2 steps to shard across 2 TCs.
    if (-(-B // bt)) * nf < 2:
        bigger = [n for n in valid_nfs if n >= 2 and step_bytes(bt, n) <= budget_bytes]
        if bigger:
            nf = bigger[0]
    return bt, nf


# ----------------------------------------------------------------------------
# Wrapper
# ----------------------------------------------------------------------------
def flexi_position_add(ogm, map_img, flow,
                       ogm_pos, map_pos, flow_pos,
                       base_pos_embed_size: int):
    """Adds the (resized) position embeddings to all three streams in one kernel."""
    B = ogm.shape[0]
    assert map_img.shape[0] == B and flow.shape[0] == B

    streams, pos_rows, shapes = [], [], []
    for x, pos in ((ogm, ogm_pos), (map_img, map_pos), (flow, flow_pos)):
        _, n, c = x.shape
        new_size = int(round(math.sqrt(n)))
        assert new_size * new_size == n, "tokens must form a square grid"
        resized = resize_pos_embed_separable(pos, base_pos_embed_size, new_size)
        streams.append(x.reshape(B, n * c))                         # lane-dense slab
        pos_rows.append(resized.reshape(1, n * c).astype(x.dtype))  # pre-cast: no in-kernel cast
        shapes.append(x.shape)

    feats = [int(s.shape[1]) for s in streams]
    itemsizes = [s.dtype.itemsize for s in streams]

    vmem_cap = _vmem_capacity_bytes()
    budget = int(0.4 * vmem_cap)          # double-buffered tiles must fit comfortably
    bt, nf = _choose_tiling(B, feats, itemsizes, budget)
    grid = (-(-B // bt), nf)

    def x_spec(f):
        return pl.BlockSpec((bt, f // nf), lambda b, fi: (b, fi))

    def p_spec(f):
        # pos block tracks only the feature tile -> bounded, sublane-padded footprint
        return pl.BlockSpec((1, f // nf), lambda b, fi: (0, fi))

    token_bytes = sum(int(s.size) * isz for s, isz in zip(streams, itemsizes))
    pos_bytes = sum(int(p.size) * p.dtype.itemsize for p in pos_rows)
    cost = pl.CostEstimate(
        flops=sum(int(s.size) for s in streams),
        transcendentals=0,
        bytes_accessed=2 * token_bytes + pos_bytes,   # purely HBM-bound add
    )

    outs = pl.pallas_call(
        _fused_bias_add_kernel,
        out_shape=tuple(jax.ShapeDtypeStruct(s.shape, s.dtype) for s in streams),
        grid_spec=pltpu.PrefetchScalarGridSpec(
            num_scalar_prefetch=0,
            grid=grid,
            in_specs=[x_spec(feats[0]), x_spec(feats[1]), x_spec(feats[2]),
                      p_spec(feats[0]), p_spec(feats[1]), p_spec(feats[2])],
            out_specs=[x_spec(feats[0]), x_spec(feats[1]), x_spec(feats[2])],
        ),
        compiler_params=pltpu.CompilerParams(
            dimension_semantics=("parallel", "parallel"),  # independent steps, megacore-safe
            vmem_limit_bytes=int(0.9 * vmem_cap),          # never bound by the scoped default
        ),
        cost_estimate=cost,
        # NOTE: input_output_aliases={0: 0, 1: 1, 2: 2} would donate the token
        # buffers (saves HBM capacity); left off because callers (and the demo
        # below) reuse the original inputs after the call.
    )(streams[0], streams[1], streams[2],
      pos_rows[0], pos_rows[1], pos_rows[2])

    return (outs[0].reshape(shapes[0]),
            outs[1].reshape(shapes[1]),
            outs[2].reshape(shapes[2]))


# ----------------------------------------------------------------------------
# Module equivalent
# ----------------------------------------------------------------------------
class FlexiPositionEncoderPallas:
    def __init__(self, embed_dim, img_size, num_patches, base_pos_embed_size, key):
        self.embed_dim = embed_dim
        self.img_size = img_size
        self.base_pos_embed_size = base_pos_embed_size
        k1, k2, k3 = jax.random.split(key, 3)
        # trunc_normal_(std=0.02): truncated standard normal at +-2, scaled.
        init = lambda k: 0.02 * jax.random.truncated_normal(
            k, -2.0, 2.0, (1, num_patches, embed_dim), dtype=jnp.float32
        )
        self.ogm_pos_embed = init(k1)
        self.map_pos_embed = init(k2)
        self.flow_pos_embed = init(k3)

    def __call__(self, ogm, map_img, flow):
        return flexi_position_add(
            ogm, map_img, flow,
            self.ogm_pos_embed, self.map_pos_embed, self.flow_pos_embed,
            self.base_pos_embed_size,
        )


if __name__ == "__main__":
    key = jax.random.PRNGKey(0)
    kp, ka, kb, kc = jax.random.split(key, 4)

    embed_dim = 32
    base_pos_embed_size = 4              # base grid 4x4 -> num_patches = 16
    num_patches = base_pos_embed_size ** 2
    img_size = (16, 16)
    B = 2

    enc = FlexiPositionEncoderPallas(
        embed_dim, img_size, num_patches, base_pos_embed_size, kp
    )

    # ogm / flow on an 8x8 token grid (upsampled pos embed), map on 4x4 (identity).
    ogm = jax.random.normal(ka, (B, 8 * 8, embed_dim), dtype=jnp.float32)
    map_img = jax.random.normal(kb, (B, 4 * 4, embed_dim), dtype=jnp.float32)
    flow = jax.random.normal(kc, (B, 8 * 8, embed_dim), dtype=jnp.float32)

    out_ogm, out_map, out_flow = enc(ogm, map_img, flow)
    jax.block_until_ready((out_ogm, out_map, out_flow))

    # Sanity check against a pure-numpy reference using the dense kron formulation.
    def ref(x, pos, base):
        n_new = x.shape[1]
        new_size = int(round(math.sqrt(n_new)))
        w1d = bicubic_resize_matrix(base, new_size).astype(np.float64)
        w_full = np.kron(w1d, w1d)
        resized = w_full @ np.asarray(pos, dtype=np.float64).reshape(base * base, -1)
        return np.asarray(x, dtype=np.float64) + resized[None]

    np.testing.assert_allclose(
        out_ogm, ref(ogm, enc.ogm_pos_embed, base_pos_embed_size), rtol=1e-5, atol=1e-5
    )
    np.testing.assert_allclose(
        out_map, ref(map_img, enc.map_pos_embed, base_pos_embed_size), rtol=1e-5, atol=1e-5
    )
    np.testing.assert_allclose(
        out_flow, ref(flow, enc.flow_pos_embed, base_pos_embed_size), rtol=1e-5, atol=1e-5
    )

    print("KERNEL_OK")
</pallas_src>

<mosaic_0001>
module attributes {stable_mosaic.version = 11 : i64} {
  func.func @_fused_bias_add_kernel(%arg0: i32, %arg1: i32, %arg2: memref<2x1024xf32, #tpu.memory_space<vmem>>, %arg3: memref<2x256xf32, #tpu.memory_space<vmem>>, %arg4: memref<2x1024xf32, #tpu.memory_space<vmem>>, %arg5: memref<1x1024xf32, #tpu.memory_space<vmem>>, %arg6: memref<1x256xf32, #tpu.memory_space<vmem>>, %arg7: memref<1x1024xf32, #tpu.memory_space<vmem>>, %arg8: memref<2x1024xf32, #tpu.memory_space<vmem>>, %arg9: memref<2x256xf32, #tpu.memory_space<vmem>>, %arg10: memref<2x1024xf32, #tpu.memory_space<vmem>>) attributes {dimension_semantics = [#tpu.dimension_semantics<parallel>, #tpu.dimension_semantics<parallel>], iteration_bounds = array<i64: 1, 2>, scalar_prefetch = 0 : i64, scratch_operands = 0 : i64, tpu.core_type = #tpu.core_type<tc>, window_params = [{transform_indices = @transform_0, window_bounds = array<i64: 2, 1024>}, {transform_indices = @transform_1, window_bounds = array<i64: 2, 256>}, {transform_indices = @transform_2, window_bounds = array<i64: 2, 1024>}, {transform_indices = @transform_3, window_bounds = array<i64: 1, 1024>}, {transform_indices = @transform_4, window_bounds = array<i64: 1, 256>}, {transform_indices = @transform_5, window_bounds = array<i64: 1, 1024>}, {transform_indices = @transform_6, window_bounds = array<i64: 2, 1024>}, {transform_indices = @transform_7, window_bounds = array<i64: 2, 256>}, {transform_indices = @transform_8, window_bounds = array<i64: 2, 1024>}]} {
    %c0 = arith.constant 0 : index
    %c0_0 = arith.constant 0 : index
    %0 = vector.load %arg2[%c0, %c0_0] : memref<2x1024xf32, #tpu.memory_space<vmem>>, vector<2x1024xf32>
    %c0_1 = arith.constant 0 : index
    %c0_2 = arith.constant 0 : index
    %1 = vector.load %arg5[%c0_1, %c0_2] : memref<1x1024xf32, #tpu.memory_space<vmem>>, vector<1x1024xf32>
    %2 = vector.broadcast %1 : vector<1x1024xf32> to vector<2x1024xf32>
    %3 = arith.addf %0, %2 : vector<2x1024xf32>
    %c0_3 = arith.constant 0 : index
    %c0_4 = arith.constant 0 : index
    %4 = vector.load %arg8[%c0_3, %c0_4] : memref<2x1024xf32, #tpu.memory_space<vmem>>, vector<2x1024xf32>
    tpu.vector_store %arg8[%c0_3, %c0_4], %3 {strides = array<i32>} : memref<2x1024xf32, #tpu.memory_space<vmem>>, vector<2x1024xf32>,
    %c0_5 = arith.constant 0 : index
    %c0_6 = arith.constant 0 : index
    %5 = vector.load %arg3[%c0_5, %c0_6] : memref<2x256xf32, #tpu.memory_space<vmem>>, vector<2x256xf32>
    %c0_7 = arith.constant 0 : index
    %c0_8 = arith.constant 0 : index
    %6 = vector.load %arg6[%c0_7, %c0_8] : memref<1x256xf32, #tpu.memory_space<vmem>>, vector<1x256xf32>
    %7 = vector.broadcast %6 : vector<1x256xf32> to vector<2x256xf32>
    %8 = arith.addf %5, %7 : vector<2x256xf32>
    %c0_9 = arith.constant 0 : index
    %c0_10 = arith.constant 0 : index
    %9 = vector.load %arg9[%c0_9, %c0_10] : memref<2x256xf32, #tpu.memory_space<vmem>>, vector<2x256xf32>
    tpu.vector_store %arg9[%c0_9, %c0_10], %8 {strides = array<i32>} : memref<2x256xf32, #tpu.memory_space<vmem>>, vector<2x256xf32>,
    %c0_11 = arith.constant 0 : index
    %c0_12 = arith.constant 0 : index
    %10 = vector.load %arg4[%c0_11, %c0_12] : memref<2x1024xf32, #tpu.memory_space<vmem>>, vector<2x1024xf32>
    %c0_13 = arith.constant 0 : index
    %c0_14 = arith.constant 0 : index
    %11 = vector.load %arg7[%c0_13, %c0_14] : memref<1x1024xf32, #tpu.memory_space<vmem>>, vector<1x1024xf32>
    %12 = vector.broadcast %11 : vector<1x1024xf32> to vector<2x1024xf32>
    %13 = arith.addf %10, %12 : vector<2x1024xf32>
    %c0_15 = arith.constant 0 : index
    %c0_16 = arith.constant 0 : index
    %14 = vector.load %arg10[%c0_15, %c0_16] : memref<2x1024xf32, #tpu.memory_space<vmem>>, vector<2x1024xf32>
    tpu.vector_store %arg10[%c0_15, %c0_16], %13 {strides = array<i32>} : memref<2x1024xf32, #tpu.memory_space<vmem>>, vector<2x1024xf32>,
    return
  }
  func.func @transform_0(%arg0: i32, %arg1: i32) -> (i32, i32) {
    %c0_i32 = arith.constant 0 : i32
    return %arg0, %arg1 : i32, i32
  }
  func.func @transform_1(%arg0: i32, %arg1: i32) -> (i32, i32) {
    %c0_i32 = arith.constant 0 : i32
    return %arg0, %arg1 : i32, i32
  }
  func.func @transform_2(%arg0: i32, %arg1: i32) -> (i32, i32) {
    %c0_i32 = arith.constant 0 : i32
    return %arg0, %arg1 : i32, i32
  }
  func.func @transform_3(%arg0: i32, %arg1: i32) -> (i32, i32) {
    %c0_i32 = arith.constant 0 : i32
    %c0_i32_0 = arith.constant 0 : i32
    return %c0_i32, %arg1 : i32, i32
  }
  func.func @transform_4(%arg0: i32, %arg1: i32) -> (i32, i32) {
    %c0_i32 = arith.constant 0 : i32
    %c0_i32_0 = arith.constant 0 : i32
    return %c0_i32, %arg1 : i32, i32
  }
  func.func @transform_5(%arg0: i32, %arg1: i32) -> (i32, i32) {
    %c0_i32 = arith.constant 0 : i32
    %c0_i32_0 = arith.constant 0 : i32
    return %c0_i32, %arg1 : i32, i32
  }
  func.func @transform_6(%arg0: i32, %arg1: i32) -> (i32, i32) {
    %c0_i32 = arith.constant 0 : i32
    return %arg0, %arg1 : i32, i32
  }
  func.func @transform_7(%arg0: i32, %arg1: i32) -> (i32, i32) {
    %c0_i32 = arith.constant 0 : i32
    return %arg0, %arg1 : i32, i32
  }
  func.func @transform_8(%arg0: i32, %arg1: i32) -> (i32, i32) {
    %c0_i32 = arith.constant 0 : i32
    return %arg0, %arg1 : i32, i32
  }
}

</mosaic_0001>

<bundles_post_ra>
// kernel: tpu_custom_call.1
= control target key start
LH: loop header
LB: loop body
LE: loop exit
PB: predicated region body
PF: predicated region fallthrough
CT: control target
= control target key end

     0   :  { %s1817_s0 = inlined_call_operand.hbm [shape: f32[2,2048], index: 0, kind: input, shape index: {}]   ;;  %s1818_s1 = inlined_call_operand.hbm [shape: f32[2,512], index: 1, kind: input, shape index: {}]   ;;  %s1819_s2 = inlined_call_operand.hbm [shape: f32[2,2048], index: 2, kind: input, shape index: {}]   ;;  %s1820_s3 = inlined_call_operand.hbm [shape: f32[1,2048], index: 3, kind: input, shape index: {}]   ;;  %s1821_s4 = inlined_call_operand.hbm [shape: f32[1,512], index: 4, kind: input, shape index: {}]   ;;  %s1822_s5 = inlined_call_operand.hbm [shape: f32[1,2048], index: 5, kind: input, shape index: {}]   ;;  %s1823_s6 = inlined_call_operand.hbm [shape: f32[2,2048], index: 6, kind: output, shape index: {0}]   ;;  %s1824_s7 = inlined_call_operand.hbm [shape: f32[2,512], index: 7, kind: output, shape index: {1}]   ;;  %s1825_s8 = inlined_call_operand.hbm [shape: f32[2,2048], index: 8, kind: output, shape index: {2}]  }
   0x1   :  { %1836 = sst [smem:[#allocation29_spill]] %s1817_s0 }
   0x2   :  { %1837 = sst [smem:[#allocation30_spill]] %s1818_s1 }
   0x3   :  { %1838 = sst [smem:[#allocation31_spill]] %s1819_s2 }
   0x4   :  { %1839 = sst [smem:[#allocation32_spill]] %s1825_s8 }
   0x5   :  { %14 = vsyncpa [#allocation3], 0 }
   0x6   :  { %16 = vsyncpa [#allocation3 + $0x1], 0 }
   0x7   :  { %17 = vsyncpa [#allocation6], 0 }
   0x8   :  { %19 = vsyncpa [#allocation6 + $0x1], 0 }
   0x9   :  { %20 = vsyncpa [#allocation9], 0 }
   0xa   :  { %22 = vsyncpa [#allocation9 + $0x1], 0 }
   0xb   :  { %23 = vsyncpa [#allocation12], 0 }
   0xc   :  { %25 = vsyncpa [#allocation12 + $0x1], 0 }
   0xd   :  { %26 = vsyncpa [#allocation4], 0 }
   0xe   :  { %28 = vsyncpa [#allocation4 + $0x1], 0 }
   0xf   :  { %29 = vsyncpa [#allocation15], 0 }
  0x10   :  { %31 = vsyncpa [#allocation15 + $0x1], 0  ;;  %s1500_s27 = smov 0   ;;  %s1502_s28 = smov 0  }
  0x11   :  { %s1504_s29 = smov 0   ;;  %s1506_s30 = smov 0  }
  0x12   :  { %s1508_s9 = smov 0   ;;  %s1510_s10 = smov 0  }
  0x13 LB: > { %1840 = sst [smem:[#allocation23_spill]] %s1433_s27  ;;  %s1531_s11 = sadd.s32 4294967295, %s1453_s10   ;;  %s1453_s10 = sphi %s1510_s10, %s37_s10   ;;  %s1449_s9 = sphi %s1508_s9, %s1868_s9   ;;  %s1445_s30 = sphi %s1506_s30, %s1867_s30   ;;  %s1441_s29 = sphi %s1504_s29, %s1863_s29   ;;  %s1437_s28 = sphi %s1502_s28, %s1866_s28   ;;  %s1433_s27 = sphi %s1500_s27, %s1865_s27  }
  0x14   : > { %1841 = sst [smem:[#allocation24_spill]] %s1441_s29  ;;  %s1826_s12 = sadd.s32 4294967294, %s1453_s10  }
  0x15   : > { %1842 = sst [smem:[#allocation25_spill]] %s1453_s10  ;;  %s46_s13 = sadd.s32 1, %s1449_s9 }
  0x16   : > { %s58_s14 = sadd.s32 1, %s1441_s29  ;;  %p47_p0 = scmp.ge.s32.totalorder %s46_s13, 2 }
  0x17   : > { %p65_p1 = scmp.ne.s32.totalorder %s1441_s29, %s1437_s28  ;;  %p66_p2 = scmp.eq.s32.totalorder %s1453_s10, 0 }
  0x18   : > { %p71_p3 = scmp.ne.s32.totalorder %s1437_s28, %s1433_s27  ;;  %s1870_s13 = smov (%p47_p0, %s46_s13), 0 }
  0x19   : > { %1843 = sst [smem:[#allocation26_spill]] %s1870_s13  ;;  %p1543_p4 = por %p66_p2, %p65_p1 }
  0x1a   : > { %p72_p5 = scmp.eq.s32.totalorder %s1531_s11, 0  ;;  %s54_s16 = ssub.s32 %s1449_s9, %s1870_s13 }
  0x1b   : > { %p231_p6 = scmp.eq.s32.totalorder %s1531_s11, 1  ;;  %p56_p7 = scmp.eq.s32.totalorder %s54_s16, 0 }
  0x1c   : > { %p1551_p8 = por %p72_p5, %p71_p3  ;;  %p237_p10 = scmp.eq.s32.totalorder %s1826_s12, 1 }
  0x1d   : > { %p1555_p9 = por %p231_p6, %p65_p1  ;;  %p979_p12 = scmp.ge.s32.totalorder %s1453_s10, 2 }
  0x1e   : > { %s1562_s19 = scalar_select %p56_p7, %s1441_s29, %s58_s14  }
  0x1f   : > { %p1564_p11 = por %p237_p10, %p71_p3  ;;  %p1069_p13 = scmp.lt.s32.totalorder %s1453_s10, 2 }
  0x20   : > { %1847 = sst [smem:[#allocation27_spill]] %s1562_s19  ;;  %s1571_s21 = sand.u32 1, %s1441_s29  }
  0x21   : > { %s1848_s20 = scalar_select %p1564_p11, 1, 0 }
  0x22   : > { %s335_s22 = sand.u32 1, %s1453_s10   ;;  %s983_s23 = sshll.u32 %s1571_s21, 2 }
  0x23   : > { %1849 = sst [smem:[#allocation28_spill]] %s1848_s20  ;;  %p1577_p0 = pnand %p1069_p13, %p1543_p4 }
  0x24   : > { %s1017_s25 = sshll.u32 %s1449_s9, 2  ;;  %s1851_s1 = sld [smem:[#allocation30_spill]] }
  0x25   : > { %s339_s13 = scalar_lea.vmem [#allocation5], %s983_s23  ;;  %s1585_s15 = scalar_lea.sflag [#allocation6], %s335_s22 }
  0x26   : > { %s350_s19 = sshll.u32 %s339_s13, 4  ;;  %p995_p1 = scmp.ge.s32.totalorder %s1453_s10, 1  ;;  %s351_s19 = int_to_ptr.vmem [resolvable:$true] %s350_s19 }
  0x27   : > { %p434_p2 = scmp.lt.s32.totalorder %s1453_s10, 3  ;;  %s1834_s29 = sshll.u32 %s1571_s21, 3 }
  0x28   : > { %s383_s13 = scalar_lea.vmem [#allocation8], %s1834_s29  ;;  %s980_s10 = sshll.u32 %s1571_s21, 4 }
  0x29   : > { %p1593_p3 = pnand %p995_p1, %p434_p2  ;;  %s391_s23 = sshll.u32 %s383_s13, 4  ;;  %s392_s23 = int_to_ptr.vmem [resolvable:$true] %s391_s23 }
  0x2a   : > { %s346_s16 = scalar_lea.hbm %s1851_s1, %s1017_s25  ;;  %s1835_s25 = sshll.u32 %s1449_s9, 3 }
  0x2b   : > { %s348_s12 = sshll.u32 %s346_s16, 4  ;;  %s387_s1 = scalar_lea.hbm %s1820_s3, %s1835_s25  ;;  %s349_s12 = int_to_ptr.hbm [resolvable:$true] %s348_s12 }
  0x2c   : > { %1046 = dma.hbm_to_vmem [thread:$0]  (!%p1577_p0), %s349_s12, 64, %s351_s19, %s1585_s15  }
  0x2d   : > { %s389_s12 = sshll.u32 %s387_s1, 4  ;;  %s380_s19 = scalar_lea.sflag [#allocation9], %s335_s22  ;;  %s390_s12 = int_to_ptr.hbm [resolvable:$true] %s389_s12 }
  0x2e   : > { %1052 = dma.hbm_to_vmem [thread:$0]  (!%p1577_p0), %s390_s12, 128, %s392_s23, %s380_s19  }
  0x2f   : > { %s1016_s20 = sshll.u32 %s1449_s9, 4  ;;  %s1853_s0 = sld [smem:[#allocation29_spill]] }
  0x30   : > { %s317_s29 = scalar_lea.vmem [#allocation2], %s980_s10  ;;  %s314_s1 = scalar_lea.sflag [#allocation3], %s1571_s21 }
  0x31   : > { %s328_s14 = sshll.u32 %s317_s29, 4  ;;  %s1854_s2 = sld [smem:[#allocation31_spill]]  ;;  %s329_s14 = int_to_ptr.vmem [resolvable:$true] %s328_s14 }
  0x32   : > { %s361_s25 = scalar_lea.vmem [#allocation7], %s980_s10  ;;  %s992_s29 = sshll.u32 %s1449_s9, 1 }
  0x33   : > { %s372_s8 = sshll.u32 %s361_s25, 4  ;;  %s1855_s10 = sshll.u32 %s1449_s9, 3  ;;  %s373_s8 = int_to_ptr.vmem [resolvable:$true] %s372_s8 }
  0x35   : > { %s324_s13 = scalar_lea.hbm %s1853_s0, %s1016_s20  ;;  %s991_s0 = sshll.u32 %s1571_s21, 1 }
  0x36   : > { %s326_s16 = sshll.u32 %s324_s13, 4  ;;  %s418_s13 = scalar_lea.sflag [#allocation12], %s1571_s21  ;;  %s327_s16 = int_to_ptr.hbm [resolvable:$true] %s326_s16 }
  0x37   : > { %1043 = dma.hbm_to_vmem [thread:$0]  (!%p1577_p0), %s327_s16, 256, %s329_s14, %s314_s1  }
  0x38   : > { %s368_s12 = scalar_lea.hbm %s1854_s2, %s1016_s20  ;;  %s406_s16 = scalar_lea.hbm %s1821_s4, %s992_s29 }
  0x39   : > { %s370_s27 = sshll.u32 %s368_s12, 4  ;;  %s402_s1 = scalar_lea.vmem [#allocation10], %s991_s0  ;;  %s371_s27 = int_to_ptr.hbm [resolvable:$true] %s370_s27 }
  0x3a   : > { %1049 = dma.hbm_to_vmem [thread:$0]  (!%p1577_p0), %s371_s27, 256, %s373_s8, %s1585_s15  }
  0x3b   : > { %s410_s22 = sshll.u32 %s402_s1, 4  ;;  %s408_s20 = sshll.u32 %s406_s16, 4  ;;  %s411_s22 = int_to_ptr.vmem [resolvable:$true] %s410_s22  ;;  %s409_s20 = int_to_ptr.hbm [resolvable:$true] %s408_s20 }
  0x3c   : > { %1055 = dma.hbm_to_vmem [thread:$0]  (!%p1577_p0), %s409_s20, 32, %s411_s22, %s380_s19  }
  0x3d   : > { %s425_s12 = scalar_lea.hbm %s1822_s5, %s1855_s10  ;;  %s1856_s15 = sshll.u32 %s1571_s21, 3 }
  0x3e   : > { %s427_s2 = sshll.u32 %s425_s12, 4  ;;  %s421_s8 = scalar_lea.vmem [#allocation11], %s1856_s15  ;;  %s428_s2 = int_to_ptr.hbm [resolvable:$true] %s427_s2 }
  0x3f   : > { %s429_s27 = sshll.u32 %s421_s8, 4  ;;  %438 = sbr.rel (%p1593_p3) target bundleno = 123 (0x7b), region = 44  ;;  %s430_s27 = int_to_ptr.vmem [resolvable:$true] %s429_s27 }
  0x40   : > { %1058 = dma.hbm_to_vmem [thread:$0]  (!%p1577_p0), %s428_s2, 128, %s430_s27, %s418_s13  }
  0x41   : > { %s1641_s0 = sand.u32 (!%p1593_p3), 1, %s1437_s28  }
  0x42   : > { %s1644_s19 = sshll.u32 (!%p1593_p3), %s1641_s0, 4  ;;  %s441_s29 = scalar_lea.sflag (!%p1593_p3), [#allocation3], %s1641_s0 }
  0x43   : > { %s444_s14 = scalar_lea.vmem (!%p1593_p3), [#allocation2], %s1644_s19 }
  0x44   : > { %1408 = dma.done.wait (%p1551_p8), %s441_s29, 256  }
  0x45   : > { %1410 = vsyncadd (%p1551_p8), %s441_s29, 4294967040  ;;  %s1653_s2 = sand.u32 1, %s1531_s11   ;;  %s997_s21 = sshll.u32 %s1641_s0, 2 }
  0x46   : > { %s451_s24 = scalar_lea.sflag [#allocation6], %s1653_s2  ;;  %s1657_s26 = scalar_lea.vmem [#allocation5], %s997_s21 }
  0x47   : > { %1412 = dma.done.wait (%p1551_p8), %s451_s24, 320  }
  0x48   : > { %1414 = vsyncadd (%p1551_p8), %s451_s24, 4294966976  ;;  %s999_s16 = sshll.u32 %s1641_s0, 3  ;;  %s464_s1 = scalar_lea.vmem [#allocation7], %s1644_s19 }
  0x49   : > { %s471_s22 = scalar_lea.sflag [#allocation9], %s1653_s2  ;;  %s474_s20 = scalar_lea.vmem [#allocation8], %s999_s16 }
  0x4a   : > { %1416 = dma.done.wait (%p1551_p8), %s471_s22, 160  }
  0x4b   : > { %1418 = vsyncadd (%p1551_p8), %s471_s22, 4294967136  ;;  %s1000_s11 = sshll.u32 %s1641_s0, 1  ;;  %s491_s25 = scalar_lea.sflag [#allocation12], %s1641_s0 }
  0x4c   : > { %s484_s10 = scalar_lea.vmem [#allocation10], %s1000_s11  ;;  %s1672_s23 = scalar_lea.vmem [#allocation11], %s999_s16 }
  0x4d   : > { %1420 = dma.done.wait (%p1551_p8), %s491_s25, 128  }
  0x4e   : > { %1422 = vsyncadd (%p1551_p8), %s491_s25, 4294967168  ;;  %s1020_s12 = sshll.u32 %s1445_s30, 2  ;;  %vm590_vm0 = vcmask 1041408   ;;  %v606_v0 = vld [vmem:[%s484_s10] sm:$0x3]  ;;  %v574_v3 = vld [vmem:[%s474_s20] sm:$0xff] }
  0x4f   : > { %s1682_s27 = scalar_lea.hbm %s1824_s7, %s1020_s12  ;;  %v608_v1 = vperm.slane %v606_v0, 0  ;;  %v609_v2 = vperm.slane %v606_v0, 1  ;;  %vm592_vm1 = vcmask 1045508   ;;  %vm594_vm2 = vcmask 1043456   ;;  %s1019_s13 = sshll.u32 %s1445_s30, 4  ;;  %v1695_v17 = vld [vmem:[%s1672_s23] sm:$0xff] }
  0x50   : > { %s1685_s17 = scalar_lea.vmem [#allocation14], %s997_s21  ;;  %v576_v4 = vperm.slane %v574_v3, 0  ;;  %v577_v5 = vperm.slane %v574_v3, 1  ;;  %v578_v6 = vperm.slane %v574_v3, 2  ;;  %v579_v7 = vperm.slane %v574_v3, 3  ;;  %s690_s24 = sshll.u32 %s1682_s27, 4  ;;  %s1712_s24 = int_to_ptr.hbm [resolvable:$true] %s690_s24 }
  0x51   : > { %s688_s29 = sshll.u32 %s1685_s17, 4  ;;  %v605_v8 = vld [vmem:[%s1657_s26] sm:$0xf]  ;;  %v610_v9 = vrot.slane %v609_v2, 6  ;;  %v580_v10 = vperm.slane %v574_v3, 4  ;;  %v581_v11 = vperm.slane %v574_v3, 5  ;;  %s1702_s26 = scalar_lea.hbm %s1823_s6, %s1019_s13  ;;  %s1705_s29 = int_to_ptr.vmem [resolvable:$true] %s688_s29 }
  0x52   : > { %v582_v12 = vperm.slane %v574_v3, 6  ;;  %v584_v13 = vrot.slane %v577_v5, 6  ;;  %v585_v14 = vrot.slane %v578_v6, 4  ;;  %v586_v15 = vrot.slane %v579_v7, 2  ;;  %s1691_s21 = scalar_lea.vmem [#allocation13], %s1644_s19  ;;  %v572_v19 = vld [vmem:[%s444_s14] sm:$0xff] }
  0x53   : > { %s671_s16 = sshll.u32 %s1691_s21, 4  ;;  %v583_v16 = vperm.slane %v574_v3, 7  ;;  %v611_v18 = vsel %vm590_vm0, %v608_v1, %v610_v9  ;;  %v587_v20 = vrot.slane %v581_v11, 6  ;;  %v619_v22 = vperm.slane %v1695_v17, 0  ;;  %v573_v28 = vld [vmem:[%s444_s14 + $0x8] sm:$0xff]  ;;  %s673_s11 = sshll.u32 %s1702_s26, 4  ;;  %s1715_s16 = int_to_ptr.vmem [resolvable:$true] %s671_s16  ;;  %s674_s11 = int_to_ptr.hbm [resolvable:$true] %s673_s11 }
  0x54   : > { %v588_v21 = vrot.slane %v582_v12, 4  ;;  %v613_v23 = vadd.f32 %v611_v18, %v605_v8  ;;  %v591_v24 = vsel %vm590_vm0, %v576_v4, %v584_v13  ;;  %v593_v25 = vsel %vm592_vm1, %v585_v14, %v586_v15  ;;  %s1857_s25 = sld [smem:[#allocation32_spill]]  ;;  %s651_s12 = scalar_lea.sflag [#allocation15], %s1653_s2 }
  0x55   : > { %v589_v26 = vrot.slane %v583_v16, 2  ;;  %v595_v27 = vsel %vm594_vm2, %v591_v24, %v593_v25  ;;  %v596_v29 = vsel %vm590_vm0, %v580_v10, %v587_v20  ;;  %v620_v30 = vperm.slane %v1695_v17, 1  ;;  %s1313_s15 = sshra.s32 %s1712_s24, 4  ;;  %s1314_s15 = int_to_ptr.hbm [resolvable:$true] %s1313_s15 }
  0x56   : > { %v621_v31 = vperm.slane %v1695_v17, 2  ;;  %614 = vst [vmem:[%s1685_s17] sm:$0xf] %v613_v23  ;;  %v601_v32 = vadd.f32 %v595_v27, %v572_v19  ;;  %v622_v34 = vperm.slane %v1695_v17, 3  ;;  %v623_v35 = vperm.slane %v1695_v17, 4  ;;  %s1315_s8 = scalar_lea.hbm %s1314_s15, 4  ;;  %s1319_s17 = scalar_lea.hbm %s1824_s7, 8 }
  0x57   : > { %v597_v33 = vsel %vm592_vm1, %v588_v21, %v589_v26  ;;  %v627_v37 = vrot.slane %v620_v30, 6  ;;  %v624_v39 = vperm.slane %v1695_v17, 5  ;;  %p1316_p4 = scmp.ne.s32.totalorder %s1314_s15, %s1315_s8  ;;  %p1320_p7 = scmp.lt.s32.totalorder %s1314_s15, %s1824_s7 }
  0x58   : > { %v598_v36 = vsel %vm594_vm2, %v596_v29, %v597_v33  ;;  %v628_v38 = vrot.slane %v621_v31, 4  ;;  %p1321_p8 = scmp.lt.s32.totalorder %s1319_s17, %s1315_s8 }
  0x59   : > { %p1317_p5 = pnand %p1316_p4, %p1555_p9 }
  0x5a   : > { %s1732_s23 = scalar_lea.hbm %s1857_s25, %s1019_s13  ;;  %p1322_p10 = por %p1321_p8, %p1320_p7 }
  0x5b   : > { %p1318_p6 = pneg %p1317_p5 }
  0x5d   : > { %p1323_p13 = pnand %p1322_p10, %p1318_p6 }
  0x5f   : > { %1326 = shalt.err (!%p1323_p13)
}
  0x60   : > { %1035 = dma.vmem_to_hbm [thread:$0]  (%p1555_p9), %s1705_s29, 64, %s1712_s24, %s651_s12   ;;  %603 = vst [vmem:[%s1691_s21] sm:$0xff] %v601_v32  ;;  %v602_v40 = vadd.f32 %v598_v36, %v573_v28  ;;  %v629_v41 = vrot.slane %v622_v34, 2  ;;  %v625_v42 = vperm.slane %v1695_v17, 6  ;;  %v626_v43 = vperm.slane %v1695_v17, 7  ;;  %v615_v44 = vld [vmem:[%s464_s1] sm:$0xff]  ;;  %v616_v51 = vld [vmem:[%s464_s1 + $0x8] sm:$0xff] }
  0x61   : > { %v633_v45 = vsel %vm590_vm0, %v619_v22, %v627_v37  ;;  %v630_v46 = vrot.slane %v624_v39, 6  ;;  %s562_s29 = scalar_lea.vmem [#allocation16], %s1644_s19  ;;  %s707_s20 = sshll.u32 %s1732_s23, 4  ;;  %s708_s20 = int_to_ptr.hbm [resolvable:$true] %s707_s20 }
  0x62   : > { %604 = vst [vmem:[%s1691_s21 + $0x8] sm:$0xff] %v602_v40  ;;  %v634_v47 = vsel %vm592_vm1, %v628_v38, %v629_v41  ;;  %s705_s24 = sshll.u32 %s562_s29, 4  ;;  %v631_v48 = vrot.slane %v625_v42, 4  ;;  %v632_v49 = vrot.slane %v626_v43, 2  ;;  %s646_s26 = scalar_lea.sflag [#allocation4], %s1641_s0  ;;  %s706_s24 = int_to_ptr.vmem [resolvable:$true] %s705_s24 }
  0x63   : > { %v635_v50 = vsel %vm594_vm2, %v633_v45, %v634_v47  ;;  %v636_v52 = vsel %vm590_vm0, %v623_v35, %v630_v46  ;;  %s1341_s10 = sshra.s32 %s674_s11, 4  ;;  %s1347_s8 = scalar_lea.hbm %s1823_s6, 32  ;;  %s1342_s10 = int_to_ptr.hbm [resolvable:$true] %s1341_s10 }
  0x64   : > { %s1343_s14 = scalar_lea.hbm %s1342_s10, 16  ;;  %p1348_p3 = scmp.lt.s32.totalorder %s1342_s10, %s1823_s6 }
  0x65   : > { %p1344_p0 = scmp.ne.s32.totalorder %s1342_s10, %s1343_s14  ;;  %p1349_p4 = scmp.lt.s32.totalorder %s1347_s8, %s1343_s14 }
  0x67   : > { %p1345_p1 = pnand %p1344_p0, %p1555_p9  ;;  %p1350_p5 = por %p1349_p4, %p1348_p3 }
  0x69   : > { %p1346_p2 = pneg %p1345_p1 }
  0x6b   : > { %p1351_p6 = pnand %p1350_p5, %p1346_p2 }
  0x6d   : > { %1354 = shalt.err (!%p1351_p6)
}
  0x6e   : > { %1034 = dma.vmem_to_hbm [thread:$0]  (%p1555_p9), %s1715_s16, 256, %s674_s11, %s646_s26   ;;  %v641_v53 = vadd.f32 %v635_v50, %v615_v44  ;;  %v637_v54 = vsel %vm592_vm1, %v631_v48, %v632_v49 }
  0x6f   : > { %v638_v55 = vsel %vm594_vm2, %v636_v52, %v637_v54  ;;  %s1369_s0 = sshra.s32 %s708_s20, 4  ;;  %s1375_s16 = scalar_lea.hbm %s1857_s25, 32  ;;  %s1370_s0 = int_to_ptr.hbm [resolvable:$true] %s1369_s0 }
  0x70   : > { %643 = vst [vmem:[%s562_s29] sm:$0xff] %v641_v53  ;;  %v642_v56 = vadd.f32 %v638_v55, %v616_v51  ;;  %s1371_s19 = scalar_lea.hbm %s1370_s0, 16  ;;  %p1376_p13 = scmp.lt.s32.totalorder %s1370_s0, %s1857_s25 }
  0x71   : > { %p1372_p7 = scmp.ne.s32.totalorder %s1370_s0, %s1371_s19  ;;  %p1377_p0 = scmp.lt.s32.totalorder %s1375_s16, %s1371_s19 }
  0x72   : > { %644 = vst [vmem:[%s562_s29 + $0x8] sm:$0xff] %v642_v56 }
  0x73   : > { %p1373_p8 = pnand %p1372_p7, %p1555_p9  ;;  %p1378_p1 = por %p1377_p0, %p1376_p13 }
  0x75   : > { %p1374_p10 = pneg %p1373_p8 }
  0x77   : > { %p1379_p2 = pnand %p1378_p1, %p1374_p10 }
  0x79   : > { %1382 = shalt.err (!%p1379_p2)
}
  0x7a   : > { %1036 = dma.vmem_to_hbm [thread:$0]  (%p1555_p9), %s706_s24, 256, %s708_s20, %s651_s12  }
  0x7b PF: > { %s1858_s13 = sld [smem:[#allocation23_spill]]  ;;  %p1060_p3 = pnand %p979_p12, %p1564_p11 }
  0x7c   : > { %s1860_s29 = sld [smem:[#allocation25_spill]] }
  0x7d   : > { %p1061_p4 = pneg %p1060_p3 }
  0x81   : > { %s719_s26 = sand.u32 1, %s1858_s13  }
  0x82   : > { %s720_s10 = scalar_lea.sflag [#allocation4], %s719_s26 }
  0x83   : > { %1424 = dma.done.wait (%p1061_p4), %s720_s10, 256  }
  0x84   : > { %1426 = vsyncadd (%p1061_p4), %s720_s10, 4294967040  ;;  %s1861_s14 = sadd.s32 4294967294, %s1860_s29  }
  0x85   : > { %s729_s21 = sand.u32 1, %s1861_s14  }
  0x86   : > { %s730_s15 = scalar_lea.sflag [#allocation15], %s729_s21 }
  0x87   : > { %1428 = dma.done.wait (%p1061_p4), %s730_s15, 320  }
  0x88   : > { %1430 = vsyncadd (%p1061_p4), %s730_s15, 4294966976  ;;  %s37_s10 = sadd.s32 1, %s1860_s29   ;;  %s1862_s18 = sld [smem:[#allocation24_spill]] }
  0x89   : > { %p34_p9 = scmp.ge.s32.totalorder %s37_s10, 4   ;;  %s1863_s29 = sld [smem:[#allocation27_spill]] }
  0x8a   : > { %s1864_s2 = sld [smem:[#allocation26_spill]]  ;;  %s1865_s27 = smov %s1437_s28 }
  0x8b   : > { %s1867_s30 = smov %s1449_s9 }
  0x8c   :  { %36 = sbr.rel (!%p34_p9) target bundleno = 19 (0x13), region = 182 }
  0x8e   : > { %s1866_s28 = smov %s1862_s18 }
  0x90   : > { %s1868_s9 = smov %s1864_s2 }
  0x91   :  { %746 = vsyncpa [#allocation3], 1 }
  0x92   :  { %748 = vsyncpa [#allocation3 + $0x1], 1 }
  0x93   :  { %749 = vsyncpa [#allocation6], 1 }
  0x94   :  { %751 = vsyncpa [#allocation6 + $0x1], 1 }
  0x95   :  { %752 = vsyncpa [#allocation9], 1 }
  0x96   :  { %754 = vsyncpa [#allocation9 + $0x1], 1 }
  0x97   :  { %755 = vsyncpa [#allocation12], 1 }
  0x98   :  { %757 = vsyncpa [#allocation12 + $0x1], 1 }
  0x99   :  { %758 = vsyncpa [#allocation4], 1 }
  0x9a   :  { %760 = vsyncpa [#allocation4 + $0x1], 1 }
  0x9b   :  { %761 = vsyncpa [#allocation15], 1 }
  0x9c   :  { %763 = vsyncpa [#allocation15 + $0x1], 1 }

</bundles_post_ra>
